<compile_context>
chip_gen: v7x
topology: tpu7x:2x2x1
jax: 0.10.0
libtpu: 0.0.40
codegen_flags: <defaults>
</compile_context>

<pallas_src>
import math
import functools

import jax
import jax.numpy as jnp
from jax.experimental import pallas as pl
from jax.experimental.pallas import tpu as pltpu

LN_EPS = 1e-5  # PyTorch nn.LayerNorm default


def _tpu_kind() -> str:
    try:
        return jax.devices()[0].device_kind.lower()
    except Exception:
        return ""


# ----------------------------------------------------------------------------
# Kernel 1: fused mu/sigma estimator heads
#   mu    = Linear -> LayerNorm -> ReLU -> Linear
#   sigma = Linear -> LayerNorm -> ReLU -> Linear -> Softplus, then + 1e-6
# Both heads share one pallas_call (query loaded once, one launch), and the
# kernel also emits inv_sigma = 1/sigma so the big [B,T,D] Mahalanobis kernel
# only multiplies.
# ----------------------------------------------------------------------------
def _estimator_kernel(q_ref,
                      w1m_ref, b1m_ref, g1m_ref, be1m_ref, w2m_ref, b2m_ref,
                      w1s_ref, b1s_ref, g1s_ref, be1s_ref, w2s_ref, b2s_ref,
                      mu_ref, sigma_ref, inv_sigma_ref):
    x = q_ref[...]                                                    # [tb, Dq]

    def head(w1, b1, g1, be1, w2, b2):
        h = jnp.dot(x, w1[...], preferred_element_type=jnp.float32) + b1[...]
        mean = jnp.mean(h, axis=-1, keepdims=True)
        var = jnp.mean((h - mean) ** 2, axis=-1, keepdims=True)       # biased var
        h = (h - mean) * jax.lax.rsqrt(var + LN_EPS)
        h = h * g1[...] + be1[...]
        h = jnp.maximum(h, 0.0)                                       # ReLU
        return jnp.dot(h, w2[...], preferred_element_type=jnp.float32) + b2[...]

    mu = head(w1m_ref, b1m_ref, g1m_ref, be1m_ref, w2m_ref, b2m_ref)
    sig = jax.nn.softplus(
        head(w1s_ref, b1s_ref, g1s_ref, be1s_ref, w2s_ref, b2s_ref)) + 1e-6
    mu_ref[...] = mu
    sigma_ref[...] = sig
    inv_sigma_ref[...] = 1.0 / sig


def run_estimators(query, pm, ps):
    B, Dq = query.shape
    Dv = pm["w1"].shape[1]

    kind = _tpu_kind()
    wide_mxu = ("v6" in kind) or ("v7" in kind)
    # 128 rows matches v5e's 128-wide MXU; 256 fills the 256-row MXU on v6e/v7x.
    tb = 256 if (wide_mxu and B >= 512) else min(B, 128)
    grid = (pl.cdiv(B, tb),)   # partial tail block: OOB rows read garbage,
                               # all ops are row-local, OOB writes are dropped.

    # TODO(synk): for production Dv >= 128 the two heads' first matmuls could be
    # lane-fused into one x @ [W1_mu | W1_sigma]; at Dv=64 the half-slices cross
    # the (8,128) tile and the relayout eats the win, so keep them separate.
    weights = (pm["w1"], pm["b1"], pm["g1"], pm["be1"], pm["w2"], pm["b2"],
               ps["w1"], ps["b1"], ps["g1"], ps["be1"], ps["w2"], ps["b2"])
    in_specs = [pl.BlockSpec((tb, Dq), lambda i: (i, 0))]
    in_specs += [pl.BlockSpec(w.shape, lambda i: (0, 0)) for w in weights]
    out_spec = pl.BlockSpec((tb, Dv), lambda i: (i, 0))

    mu, sigma, inv_sigma = pl.pallas_call(
        _estimator_kernel,
        out_shape=(jax.ShapeDtypeStruct((B, Dv), jnp.float32),
                   jax.ShapeDtypeStruct((B, Dv), jnp.float32),
                   jax.ShapeDtypeStruct((B, Dv), jnp.float32)),
        grid=grid,
        in_specs=in_specs,
        out_specs=(out_spec, out_spec, out_spec),
        compiler_params=pltpu.CompilerParams(dimension_semantics=("parallel",)),
    )(query, *weights)
    return mu, sigma, inv_sigma


# ----------------------------------------------------------------------------
# Kernel 2: Mahalanobis distance  sum((x - mu)^2 * inv_sigma, axis=-1)
# Tiled over batch AND time; no padding of the HBM-resident [B,T,D] tensor
# (grid = cdiv, tail handled by dropped OOB writes); 1/sigma hoisted out.
# ----------------------------------------------------------------------------
def _mahalanobis_kernel(feat_ref, mu_ref, inv_sigma_ref, out_ref):
    feat = feat_ref[...].astype(jnp.float32)           # bf16 inputs upcast here
    centered = feat - mu_ref[...][:, None, :]
    out_ref[...] = jnp.sum(centered * centered * inv_sigma_ref[...][:, None, :],
                           axis=-1)


def _mahalanobis_tiling(B, T, D):
    kind = _tpu_kind()
    is_v7 = "v7" in kind
    # v7x has only 64 MiB physical VMEM per TensorCore -> keep scoped <= 32 MiB.
    vmem_limit = (32 << 20) if is_v7 else (64 << 20)
    headroom = 8 << 20

    tb_b = 8 if B > 8 else B
    while True:
        # double-buffered feature tile + double-buffered output block, per T row
        bytes_per_t_row = 2 * tb_b * (D + 1) * 4
        # resident mu + inv_sigma blocks (also double-buffered by the pipeline)
        fixed = 2 * 2 * tb_b * D * 4
        budget = vmem_limit - headroom - fixed
        if budget // bytes_per_t_row >= 128 or tb_b <= 1:
            break
        tb_b = max(1, tb_b // 2)

    tile_t = max(budget, 0) // bytes_per_t_row
    tile_t = max(128, min(2048, (tile_t // 128) * 128))
    if T <= tile_t:
        tile_t = T                      # block equals full dim -> no constraint
    # Never declare less VMEM than the chosen blocks actually need.
    need = tile_t * bytes_per_t_row + fixed + headroom
    vmem_limit = max(vmem_limit, need)
    return int(tb_b), int(tile_t), int(vmem_limit)


def run_mahalanobis(features, mu, inv_sigma):
    B, T, D = features.shape
    tb_b, tile_t, vmem_limit = _mahalanobis_tiling(B, T, D)
    grid = (pl.cdiv(B, tb_b), pl.cdiv(T, tile_t))

    return pl.pallas_call(
        _mahalanobis_kernel,
        out_shape=jax.ShapeDtypeStruct((B, T), jnp.float32),
        grid=grid,
        in_specs=[
            pl.BlockSpec((tb_b, tile_t, D), lambda b, t: (b, t, 0)),
            pl.BlockSpec((tb_b, D), lambda b, t: (b, 0)),
            pl.BlockSpec((tb_b, D), lambda b, t: (b, 0)),
        ],
        out_specs=pl.BlockSpec((tb_b, tile_t), lambda b, t: (b, t)),
        compiler_params=pltpu.CompilerParams(
            dimension_semantics=("parallel", "parallel"),
            vmem_limit_bytes=vmem_limit),
    )(features, mu, inv_sigma)


# ----------------------------------------------------------------------------
# Kernel 3: multi-head self-attention refiner over the K representative frames
# (PyTorch nn.MultiheadAttention, batch_first=True, head-averaged attn weights)
# A block of `tb` batches per grid step: projections run as [tb*K, D] @ [D, D]
# matmuls (MXU rows filled), only the tiny [K,dh] score/context products stay
# per-head.  Softmax uses an exact divide (attn weights are a module output).
# ----------------------------------------------------------------------------
def _mha_kernel(rep_ref,
                wq_ref, wk_ref, wv_ref, bq_ref, bk_ref, bv_ref, wo_ref, bo_ref,
                out_ref, attn_ref, *, num_heads):
    tb, K, D = rep_ref.shape
    H = num_heads
    dh = D // H
    scale = 1.0 / math.sqrt(dh)
    rows = tb * K

    x2 = rep_ref[...].reshape(rows, D)                                # [tb*K, D]
    q2 = jnp.dot(x2, wq_ref[...], preferred_element_type=jnp.float32) + bq_ref[...]
    k2 = jnp.dot(x2, wk_ref[...], preferred_element_type=jnp.float32) + bk_ref[...]
    v2 = jnp.dot(x2, wv_ref[...], preferred_element_type=jnp.float32) + bv_ref[...]
    q3 = q2.reshape(tb, K, D) * scale
    k3 = k2.reshape(tb, K, D)
    v3 = v2.reshape(tb, K, D)

    out_acc = jnp.zeros((rows, D), jnp.float32)
    attn_acc = jnp.zeros((tb, K, K), jnp.float32)
    for h in range(H):
        sl = slice(h * dh, (h + 1) * dh)
        qh = q3[:, :, sl]                                             # [tb, K, dh]
        kh = k3[:, :, sl]
        vh = v3[:, :, sl]
        s = jnp.einsum('bqd,bkd->bqk', qh, kh,
                       preferred_element_type=jnp.float32)            # [tb, K, K]
        s = s - jnp.max(s, axis=-1, keepdims=True)
        p = jnp.exp(s)
        p = p / jnp.sum(p, axis=-1, keepdims=True)        # exact softmax
        attn_acc = attn_acc + p
        ctx = jnp.einsum('bqk,bkd->bqd', p.astype(jnp.float32), vh,
                         preferred_element_type=jnp.float32)          # [tb, K, dh]
        # out projection: accumulate ctx_h @ Wo[h]  ==  concat(ctx_h) @ Wo
        out_acc = out_acc + jnp.dot(ctx.reshape(rows, dh), wo_ref[h],
                                    preferred_element_type=jnp.float32)

    out_ref[...] = (out_acc + bo_ref[...]).reshape(tb, K, D).astype(out_ref.dtype)
    # attn output last dim is K (=6) -> masked stores; tiny tensor, kept as-is
    # because the module returns head-averaged [B, K, K] weights.
    attn_ref[...] = (attn_acc * (1.0 / H)).astype(attn_ref.dtype)


def run_mha(rep_features, p, num_heads):
    B, K, D = rep_features.shape
    H = num_heads
    assert D % H == 0, "d_visual must be divisible by num_heads"
    dh = D // H

    # Out-projection pre-split per head (rows of Wo), so the kernel accumulates
    # ctx_h @ Wo[h] instead of concatenating head outputs along the lane axis.
    wo3 = p["wo"].reshape(H, dh, D)                                   # [H, dh, D]
    weight_args = (p["wq"], p["wk"], p["wv"],
                   p["bq"], p["bk"], p["bv"], wo3, p["bo"])

    tb = min(B, 16)                      # 16 batches -> 96 rows per grid step
    grid = (pl.cdiv(B, tb),)

    def full_spec(a):
        return pl.BlockSpec(a.shape, lambda i, n=a.ndim: (0,) * n)

    out, attn = pl.pallas_call(
        functools.partial(_mha_kernel, num_heads=H),
        out_shape=(jax.ShapeDtypeStruct((B, K, D), jnp.float32),
                   jax.ShapeDtypeStruct((B, K, K), jnp.float32)),
        grid=grid,
        in_specs=[pl.BlockSpec((tb, K, D), lambda i: (i, 0, 0))]
                 + [full_spec(a) for a in weight_args],
        out_specs=(pl.BlockSpec((tb, K, D), lambda i: (i, 0, 0)),
                   pl.BlockSpec((tb, K, K), lambda i: (i, 0, 0))),
        compiler_params=pltpu.CompilerParams(dimension_semantics=("parallel",)),
    )(rep_features, *weight_args)
    return out, attn


# ----------------------------------------------------------------------------
# Plain-JAX glue: gather + NTLBG representative selection (data-dependent)
# ----------------------------------------------------------------------------
def gather_representatives(video_features, indices):
    # [B, T, D], [B, K] int32 -> [B, K, D].  One fused XLA gather: K*D per batch
    # is only ~1.5 KiB, well below the size where per-row in-kernel DMAs pay off.
    return jax.vmap(lambda f, idx: f[idx])(video_features, indices)


def ntlbg_selection(distances, K):
    B, T = distances.shape
    if T <= K:
        idx = jnp.concatenate(
            [jnp.arange(T, dtype=jnp.int32), jnp.zeros((K - T,), jnp.int32)])
        return jnp.broadcast_to(idx, (B, K))

    cand_size = min(K * 3, T)

    def per_batch(dist_b):
        # torch.median returns the *lower* median for even-length inputs
        target = jnp.sort(dist_b)[(T - 1) // 2]
        d2t = jnp.abs(dist_b - target)
        _, cand = jax.lax.top_k(-d2t, cand_size)            # smallest `cand_size`
        cand = cand.astype(jnp.int32)
        if cand_size <= K:
            pad = jnp.full((K - cand_size,), cand[-1], jnp.int32)
            return jnp.concatenate([cand, pad])
        # greedy temporal farthest-point diversification over frame indices
        selected = jnp.zeros((K,), jnp.int32).at[0].set(cand[0])
        taken = jnp.zeros((cand_size,), bool).at[0].set(True)
        for step in range(1, K):
            sel = selected[:step]
            dmin = jnp.min(jnp.abs(cand[:, None] - sel[None, :]), axis=1)
            dmin = jnp.where(taken, -1, dmin)
            best = jnp.argmax(dmin)                         # first max, like np.argmax
            selected = selected.at[step].set(cand[best])
            taken = taken.at[best].set(True)
        return selected

    return jax.vmap(per_batch)(distances)


# ----------------------------------------------------------------------------
# Full forward
# ----------------------------------------------------------------------------
def ntlbg_forward(params, video_features, query_embedding,
                  num_representatives=6, num_heads=8):
    mu_q, sigma_q, inv_sigma = run_estimators(
        query_embedding, params["mu"], params["sigma"])
    distances = run_mahalanobis(video_features, mu_q, inv_sigma)
    indices = ntlbg_selection(distances, num_representatives)
    rep_features = gather_representatives(
        video_features.astype(jnp.float32), indices)
    refined, attn_w = run_mha(rep_features, params["mha"], num_heads)
    return {
        "representative_features": refined,
        "representative_indices": indices,
        "mahalanobis_distances": distances,
        "mu_q": mu_q,
        "sigma_q": sigma_q,
        "attention_weights": attn_w,
    }


# ----------------------------------------------------------------------------
# Deterministic parameter init (synthetic; shapes follow the PyTorch __init__)
# TODO(synk): temporal_weight sub-module is defined but never used in forward; omitted.
# ----------------------------------------------------------------------------
def init_params(key, d_visual, d_query):
    ks = jax.random.split(key, 12)

    def lin(k, fan_in, fan_out):
        return (jax.random.normal(k, (fan_in, fan_out), jnp.float32)
                / math.sqrt(fan_in))

    def head(k1, k2):
        return dict(
            w1=lin(k1, d_query, d_visual),
            b1=jnp.zeros((1, d_visual), jnp.float32),
            g1=jnp.ones((1, d_visual), jnp.float32),
            be1=jnp.zeros((1, d_visual), jnp.float32),
            w2=lin(k2, d_visual, d_visual),
            b2=jnp.zeros((1, d_visual), jnp.float32),
        )

    mha = dict(
        wq=lin(ks[4], d_visual, d_visual), bq=jnp.zeros((1, d_visual), jnp.float32),
        wk=lin(ks[5], d_visual, d_visual), bk=jnp.zeros((1, d_visual), jnp.float32),
        wv=lin(ks[6], d_visual, d_visual), bv=jnp.zeros((1, d_visual), jnp.float32),
        wo=lin(ks[7], d_visual, d_visual), bo=jnp.zeros((1, d_visual), jnp.float32),
    )
    return dict(mu=head(ks[0], ks[1]), sigma=head(ks[2], ks[3]), mha=mha)


if __name__ == "__main__":
    B, T = 2, 16
    d_visual, d_query = 64, 32
    K, H = 6, 8

    key = jax.random.PRNGKey(0)
    k_vid, k_qry, k_par = jax.random.split(key, 3)
    video_features = jax.random.normal(k_vid, (B, T, d_visual), jnp.float32)
    query_embedding = jax.random.normal(k_qry, (B, d_query), jnp.float32)
    params = init_params(k_par, d_visual, d_query)

    out = ntlbg_forward(params, video_features, query_embedding,
                        num_representatives=K, num_heads=H)
    jax.block_until_ready(out)

    assert out["representative_features"].shape == (B, K, d_visual)
    assert out["representative_indices"].shape == (B, K)
    assert out["mahalanobis_distances"].shape == (B, T)
    assert out["mu_q"].shape == (B, d_visual)
    assert out["sigma_q"].shape == (B, d_visual)
    assert out["attention_weights"].shape == (B, K, K)
    assert bool(jnp.all(jnp.isfinite(out["representative_features"])))
    assert bool(jnp.all(jnp.isfinite(out["mahalanobis_distances"])))
    assert bool(jnp.all(jnp.isfinite(out["attention_weights"])))
    print("KERNEL_OK")
</pallas_src>

<mosaic_0001>
module attributes {stable_mosaic.version = 11 : i64} {
  func.func @_estimator_kernel(%arg0: i32, %arg1: memref<2x32xf32, #tpu.memory_space<vmem>>, %arg2: memref<32x64xf32, #tpu.memory_space<vmem>>, %arg3: memref<1x64xf32, #tpu.memory_space<vmem>>, %arg4: memref<1x64xf32, #tpu.memory_space<vmem>>, %arg5: memref<1x64xf32, #tpu.memory_space<vmem>>, %arg6: memref<64x64xf32, #tpu.memory_space<vmem>>, %arg7: memref<1x64xf32, #tpu.memory_space<vmem>>, %arg8: memref<32x64xf32, #tpu.memory_space<vmem>>, %arg9: memref<1x64xf32, #tpu.memory_space<vmem>>, %arg10: memref<1x64xf32, #tpu.memory_space<vmem>>, %arg11: memref<1x64xf32, #tpu.memory_space<vmem>>, %arg12: memref<64x64xf32, #tpu.memory_space<vmem>>, %arg13: memref<1x64xf32, #tpu.memory_space<vmem>>, %arg14: memref<2x64xf32, #tpu.memory_space<vmem>>, %arg15: memref<2x64xf32, #tpu.memory_space<vmem>>, %arg16: memref<2x64xf32, #tpu.memory_space<vmem>>) attributes {dimension_semantics = [#tpu.dimension_semantics<parallel>], iteration_bounds = array<i64: 1>, scalar_prefetch = 0 : i64, scratch_operands = 0 : i64, tpu.core_type = #tpu.core_type<tc>, window_params = [{transform_indices = @transform_0, window_bounds = array<i64: 2, 32>}, {pipeline_mode = #tpu.pipeline_mode<synchronous>, transform_indices = @transform_1, window_bounds = array<i64: 32, 64>}, {pipeline_mode = #tpu.pipeline_mode<synchronous>, transform_indices = @transform_2, window_bounds = array<i64: 1, 64>}, {pipeline_mode = #tpu.pipeline_mode<synchronous>, transform_indices = @transform_3, window_bounds = array<i64: 1, 64>}, {pipeline_mode = #tpu.pipeline_mode<synchronous>, transform_indices = @transform_4, window_bounds = array<i64: 1, 64>}, {pipeline_mode = #tpu.pipeline_mode<synchronous>, transform_indices = @transform_5, window_bounds = array<i64: 64, 64>}, {pipeline_mode = #tpu.pipeline_mode<synchronous>, transform_indices = @transform_6, window_bounds = array<i64: 1, 64>}, {pipeline_mode = #tpu.pipeline_mode<synchronous>, transform_indices = @transform_7, window_bounds = array<i64: 32, 64>}, {pipeline_mode = #tpu.pipeline_mode<synchronous>, transform_indices = @transform_8, window_bounds = array<i64: 1, 64>}, {pipeline_mode = #tpu.pipeline_mode<synchronous>, transform_indices = @transform_9, window_bounds = array<i64: 1, 64>}, {pipeline_mode = #tpu.pipeline_mode<synchronous>, transform_indices = @transform_10, window_bounds = array<i64: 1, 64>}, {pipeline_mode = #tpu.pipeline_mode<synchronous>, transform_indices = @transform_11, window_bounds = array<i64: 64, 64>}, {pipeline_mode = #tpu.pipeline_mode<synchronous>, transform_indices = @transform_12, window_bounds = array<i64: 1, 64>}, {transform_indices = @transform_13, window_bounds = array<i64: 2, 64>}, {transform_indices = @transform_14, window_bounds = array<i64: 2, 64>}, {transform_indices = @transform_15, window_bounds = array<i64: 2, 64>}]} {
    %c0 = arith.constant 0 : index
    %c0_0 = arith.constant 0 : index
    %0 = vector.load %arg1[%c0, %c0_0] : memref<2x32xf32, #tpu.memory_space<vmem>>, vector<2x32xf32>
    %c0_1 = arith.constant 0 : index
    %c0_2 = arith.constant 0 : index
    %1 = vector.load %arg2[%c0_1, %c0_2] : memref<32x64xf32, #tpu.memory_space<vmem>>, vector<32x64xf32>
    %cst = arith.constant dense<0.000000e+00> : vector<2x64xf32>
    %2 = tpu.matmul %0, %1, %cst {dimension_numbers = #tpu.dot_dimension_numbers<[1], [0], [0], [1], [0, 0, 1, 1], [], []>} : vector<2x32xf32>, vector<32x64xf32>, vector<2x64xf32> -> vector<2x64xf32>
    %c0_3 = arith.constant 0 : index
    %c0_4 = arith.constant 0 : index
    %3 = vector.load %arg3[%c0_3, %c0_4] : memref<1x64xf32, #tpu.memory_space<vmem>>, vector<1x64xf32>
    %4 = vector.broadcast %3 : vector<1x64xf32> to vector<2x64xf32>
    %5 = arith.addf %2, %4 : vector<2x64xf32>
    %cst_5 = arith.constant dense<0.000000e+00> : vector<2xf32>
    %6 = vector.multi_reduction <add>, %5, %cst_5 [1] : vector<2x64xf32> to vector<2xf32>
    %7 = vector.shape_cast %6 : vector<2xf32> to vector<2x1xf32>
    %cst_6 = arith.constant 6.400000e+01 : f32
    %8 = vector.broadcast %cst_6 : f32 to vector<2x1xf32>
    %9 = arith.divf %7, %8 : vector<2x1xf32>
    %10 = vector.broadcast %9 : vector<2x1xf32> to vector<2x64xf32>
    %11 = arith.subf %5, %10 : vector<2x64xf32>
    %12 = arith.mulf %11, %11 : vector<2x64xf32>
    %cst_7 = arith.constant dense<0.000000e+00> : vector<2xf32>
    %13 = vector.multi_reduction <add>, %12, %cst_7 [1] : vector<2x64xf32> to vector<2xf32>
    %14 = vector.shape_cast %13 : vector<2xf32> to vector<2x1xf32>
    %cst_8 = arith.constant 6.400000e+01 : f32
    %15 = vector.broadcast %cst_8 : f32 to vector<2x1xf32>
    %16 = arith.divf %14, %15 : vector<2x1xf32>
    %17 = vector.broadcast %9 : vector<2x1xf32> to vector<2x64xf32>
    %18 = arith.subf %5, %17 : vector<2x64xf32>
    %cst_9 = arith.constant 9.99999974E-6 : f32
    %19 = vector.broadcast %cst_9 : f32 to vector<2x1xf32>
    %20 = arith.addf %16, %19 : vector<2x1xf32>
    %21 = math.rsqrt %20 : vector<2x1xf32>
    %22 = vector.broadcast %21 : vector<2x1xf32> to vector<2x64xf32>
    %23 = arith.mulf %18, %22 : vector<2x64xf32>
    %c0_10 = arith.constant 0 : index
    %c0_11 = arith.constant 0 : index
    %24 = vector.load %arg4[%c0_10, %c0_11] : memref<1x64xf32, #tpu.memory_space<vmem>>, vector<1x64xf32>
    %25 = vector.broadcast %24 : vector<1x64xf32> to vector<2x64xf32>
    %26 = arith.mulf %23, %25 : vector<2x64xf32>
    %c0_12 = arith.constant 0 : index
    %c0_13 = arith.constant 0 : index
    %27 = vector.load %arg5[%c0_12, %c0_13] : memref<1x64xf32, #tpu.memory_space<vmem>>, vector<1x64xf32>
    %28 = vector.broadcast %27 : vector<1x64xf32> to vector<2x64xf32>
    %29 = arith.addf %26, %28 : vector<2x64xf32>
    %cst_14 = arith.constant 0.000000e+00 : f32
    %30 = vector.broadcast %cst_14 : f32 to vector<2x64xf32>
    %31 = arith.maximumf %29, %30 : vector<2x64xf32>
    %c0_15 = arith.constant 0 : index
    %c0_16 = arith.constant 0 : index
    %32 = vector.load %arg6[%c0_15, %c0_16] : memref<64x64xf32, #tpu.memory_space<vmem>>, vector<64x64xf32>
    %cst_17 = arith.constant dense<0.000000e+00> : vector<2x64xf32>
    %33 = tpu.matmul %31, %32, %cst_17 {dimension_numbers = #tpu.dot_dimension_numbers<[1], [0], [0], [1], [0, 0, 1, 1], [], []>} : vector<2x64xf32>, vector<64x64xf32>, vector<2x64xf32> -> vector<2x64xf32>
    %c0_18 = arith.constant 0 : index
    %c0_19 = arith.constant 0 : index
    %34 = vector.load %arg7[%c0_18, %c0_19] : memref<1x64xf32, #tpu.memory_space<vmem>>, vector<1x64xf32>
    %35 = vector.broadcast %34 : vector<1x64xf32> to vector<2x64xf32>
    %36 = arith.addf %33, %35 : vector<2x64xf32>
    %c0_20 = arith.constant 0 : index
    %c0_21 = arith.constant 0 : index
    %37 = vector.load %arg8[%c0_20, %c0_21] : memref<32x64xf32, #tpu.memory_space<vmem>>, vector<32x64xf32>
    %cst_22 = arith.constant dense<0.000000e+00> : vector<2x64xf32>
    %38 = tpu.matmul %0, %37, %cst_22 {dimension_numbers = #tpu.dot_dimension_numbers<[1], [0], [0], [1], [0, 0, 1, 1], [], []>} : vector<2x32xf32>, vector<32x64xf32>, vector<2x64xf32> -> vector<2x64xf32>
    %c0_23 = arith.constant 0 : index
    %c0_24 = arith.constant 0 : index
    %39 = vector.load %arg9[%c0_23, %c0_24] : memref<1x64xf32, #tpu.memory_space<vmem>>, vector<1x64xf32>
    %40 = vector.broadcast %39 : vector<1x64xf32> to vector<2x64xf32>
    %41 = arith.addf %38, %40 : vector<2x64xf32>
    %cst_25 = arith.constant dense<0.000000e+00> : vector<2xf32>
    %42 = vector.multi_reduction <add>, %41, %cst_25 [1] : vector<2x64xf32> to vector<2xf32>
    %43 = vector.shape_cast %42 : vector<2xf32> to vector<2x1xf32>
    %cst_26 = arith.constant 6.400000e+01 : f32
    %44 = vector.broadcast %cst_26 : f32 to vector<2x1xf32>
    %45 = arith.divf %43, %44 : vector<2x1xf32>
    %46 = vector.broadcast %45 : vector<2x1xf32> to vector<2x64xf32>
    %47 = arith.subf %41, %46 : vector<2x64xf32>
    %48 = arith.mulf %47, %47 : vector<2x64xf32>
    %cst_27 = arith.constant dense<0.000000e+00> : vector<2xf32>
    %49 = vector.multi_reduction <add>, %48, %cst_27 [1] : vector<2x64xf32> to vector<2xf32>
    %50 = vector.shape_cast %49 : vector<2xf32> to vector<2x1xf32>
    %cst_28 = arith.constant 6.400000e+01 : f32
    %51 = vector.broadcast %cst_28 : f32 to vector<2x1xf32>
    %52 = arith.divf %50, %51 : vector<2x1xf32>
    %53 = vector.broadcast %45 : vector<2x1xf32> to vector<2x64xf32>
    %54 = arith.subf %41, %53 : vector<2x64xf32>
    %cst_29 = arith.constant 9.99999974E-6 : f32
    %55 = vector.broadcast %cst_29 : f32 to vector<2x1xf32>
    %56 = arith.addf %52, %55 : vector<2x1xf32>
    %57 = math.rsqrt %56 : vector<2x1xf32>
    %58 = vector.broadcast %57 : vector<2x1xf32> to vector<2x64xf32>
    %59 = arith.mulf %54, %58 : vector<2x64xf32>
    %c0_30 = arith.constant 0 : index
    %c0_31 = arith.constant 0 : index
    %60 = vector.load %arg10[%c0_30, %c0_31] : memref<1x64xf32, #tpu.memory_space<vmem>>, vector<1x64xf32>
    %61 = vector.broadcast %60 : vector<1x64xf32> to vector<2x64xf32>
    %62 = arith.mulf %59, %61 : vector<2x64xf32>
    %c0_32 = arith.constant 0 : index
    %c0_33 = arith.constant 0 : index
    %63 = vector.load %arg11[%c0_32, %c0_33] : memref<1x64xf32, #tpu.memory_space<vmem>>, vector<1x64xf32>
    %64 = vector.broadcast %63 : vector<1x64xf32> to vector<2x64xf32>
    %65 = arith.addf %62, %64 : vector<2x64xf32>
    %cst_34 = arith.constant 0.000000e+00 : f32
    %66 = vector.broadcast %cst_34 : f32 to vector<2x64xf32>
    %67 = arith.maximumf %65, %66 : vector<2x64xf32>
    %c0_35 = arith.constant 0 : index
    %c0_36 = arith.constant 0 : index
    %68 = vector.load %arg12[%c0_35, %c0_36] : memref<64x64xf32, #tpu.memory_space<vmem>>, vector<64x64xf32>
    %cst_37 = arith.constant dense<0.000000e+00> : vector<2x64xf32>
    %69 = tpu.matmul %67, %68, %cst_37 {dimension_numbers = #tpu.dot_dimension_numbers<[1], [0], [0], [1], [0, 0, 1, 1], [], []>} : vector<2x64xf32>, vector<64x64xf32>, vector<2x64xf32> -> vector<2x64xf32>
    %c0_38 = arith.constant 0 : index
    %c0_39 = arith.constant 0 : index
    %70 = vector.load %arg13[%c0_38, %c0_39] : memref<1x64xf32, #tpu.memory_space<vmem>>, vector<1x64xf32>
    %71 = vector.broadcast %70 : vector<1x64xf32> to vector<2x64xf32>
    %72 = arith.addf %69, %71 : vector<2x64xf32>
    %cst_40 = arith.constant 0.000000e+00 : f32
    %73 = vector.broadcast %cst_40 : f32 to vector<2x64xf32>
    %74 = arith.maximumf %72, %73 : vector<2x64xf32>
    %75 = vector.broadcast %cst_40 : f32 to vector<2x64xf32>
    %76 = arith.subf %72, %75 : vector<2x64xf32>
    %77 = arith.cmpf one, %76, %76 : vector<2x64xf32>
    %78 = vector.broadcast %cst_40 : f32 to vector<2x64xf32>
    %79 = arith.addf %72, %78 : vector<2x64xf32>
    %80 = math.absf %76 : vector<2x64xf32>
    %cst_41 = arith.constant 0.000000e+00 : f32
    %81 = vector.broadcast %cst_41 : f32 to vector<2x64xf32>
    %82 = arith.subf %81, %80 : vector<2x64xf32>
    %83 = math.exp %82 : vector<2x64xf32>
    %84 = math.log1p %83 : vector<2x64xf32>
    %85 = arith.addf %74, %84 : vector<2x64xf32>
    %86 = arith.select %77, %79, %85 : vector<2x64xi1>, vector<2x64xf32>
    %cst_42 = arith.constant 9.99999997E-7 : f32
    %87 = vector.broadcast %cst_42 : f32 to vector<2x64xf32>
    %88 = arith.addf %86, %87 : vector<2x64xf32>
    %c0_43 = arith.constant 0 : index
    %c0_44 = arith.constant 0 : index
    %89 = vector.load %arg14[%c0_43, %c0_44] : memref<2x64xf32, #tpu.memory_space<vmem>>, vector<2x64xf32>
    tpu.vector_store %arg14[%c0_43, %c0_44], %36 {strides = array<i32>} : memref<2x64xf32, #tpu.memory_space<vmem>>, vector<2x64xf32>,
    %c0_45 = arith.constant 0 : index
    %c0_46 = arith.constant 0 : index
    %90 = vector.load %arg15[%c0_45, %c0_46] : memref<2x64xf32, #tpu.memory_space<vmem>>, vector<2x64xf32>
    tpu.vector_store %arg15[%c0_45, %c0_46], %88 {strides = array<i32>} : memref<2x64xf32, #tpu.memory_space<vmem>>, vector<2x64xf32>,
    %cst_47 = arith.constant 1.000000e+00 : f32
    %91 = vector.broadcast %cst_47 : f32 to vector<2x64xf32>
    %92 = arith.divf %91, %88 : vector<2x64xf32>
    %c0_48 = arith.constant 0 : index
    %c0_49 = arith.constant 0 : index
    %93 = vector.load %arg16[%c0_48, %c0_49] : memref<2x64xf32, #tpu.memory_space<vmem>>, vector<2x64xf32>
    tpu.vector_store %arg16[%c0_48, %c0_49], %92 {strides = array<i32>} : memref<2x64xf32, #tpu.memory_space<vmem>>, vector<2x64xf32>,
    return
  }
  func.func @transform_0(%arg0: i32) -> (i32, i32) {
    %c0_i32 = arith.constant 0 : i32
    %c0_i32_0 = arith.constant 0 : i32
    return %arg0, %c0_i32 : i32, i32
  }
  func.func @transform_1(%arg0: i32) -> (i32, i32) {
    %c0_i32 = arith.constant 0 : i32
    %c0_i32_0 = arith.constant 0 : i32
    %c0_i32_1 = arith.constant 0 : i32
    return %c0_i32, %c0_i32_0 : i32, i32
  }
  func.func @transform_2(%arg0: i32) -> (i32, i32) {
    %c0_i32 = arith.constant 0 : i32
    %c0_i32_0 = arith.constant 0 : i32
    %c0_i32_1 = arith.constant 0 : i32
    return %c0_i32, %c0_i32_0 : i32, i32
  }
  func.func @transform_3(%arg0: i32) -> (i32, i32) {
    %c0_i32 = arith.constant 0 : i32
    %c0_i32_0 = arith.constant 0 : i32
    %c0_i32_1 = arith.constant 0 : i32
    return %c0_i32, %c0_i32_0 : i32, i32
  }
  func.func @transform_4(%arg0: i32) -> (i32, i32) {
    %c0_i32 = arith.constant 0 : i32
    %c0_i32_0 = arith.constant 0 : i32
    %c0_i32_1 = arith.constant 0 : i32
    return %c0_i32, %c0_i32_0 : i32, i32
  }
  func.func @transform_5(%arg0: i32) -> (i32, i32) {
    %c0_i32 = arith.constant 0 : i32
    %c0_i32_0 = arith.constant 0 : i32
    %c0_i32_1 = arith.constant 0 : i32
    return %c0_i32, %c0_i32_0 : i32, i32
  }
  func.func @transform_6(%arg0: i32) -> (i32, i32) {
    %c0_i32 = arith.constant 0 : i32
    %c0_i32_0 = arith.constant 0 : i32
    %c0_i32_1 = arith.constant 0 : i32
    return %c0_i32, %c0_i32_0 : i32, i32
  }
  func.func @transform_7(%arg0: i32) -> (i32, i32) {
    %c0_i32 = arith.constant 0 : i32
    %c0_i32_0 = arith.constant 0 : i32
    %c0_i32_1 = arith.constant 0 : i32
    return %c0_i32, %c0_i32_0 : i32, i32
  }
  func.func @transform_8(%arg0: i32) -> (i32, i32) {
    %c0_i32 = arith.constant 0 : i32
    %c0_i32_0 = arith.constant 0 : i32
    %c0_i32_1 = arith.constant 0 : i32
    return %c0_i32, %c0_i32_0 : i32, i32
  }
  func.func @transform_9(%arg0: i32) -> (i32, i32) {
    %c0_i32 = arith.constant 0 : i32
    %c0_i32_0 = arith.constant 0 : i32
    %c0_i32_1 = arith.constant 0 : i32
    return %c0_i32, %c0_i32_0 : i32, i32
  }
  func.func @transform_10(%arg0: i32) -> (i32, i32) {
    %c0_i32 = arith.constant 0 : i32
    %c0_i32_0 = arith.constant 0 : i32
    %c0_i32_1 = arith.constant 0 : i32
    return %c0_i32, %c0_i32_0 : i32, i32
  }
  func.func @transform_11(%arg0: i32) -> (i32, i32) {
    %c0_i32 = arith.constant 0 : i32
    %c0_i32_0 = arith.constant 0 : i32
    %c0_i32_1 = arith.constant 0 : i32
    return %c0_i32, %c0_i32_0 : i32, i32
  }
  func.func @transform_12(%arg0: i32) -> (i32, i32) {
    %c0_i32 = arith.constant 0 : i32
    %c0_i32_0 = arith.constant 0 : i32
    %c0_i32_1 = arith.constant 0 : i32
    return %c0_i32, %c0_i32_0 : i32, i32
  }
  func.func @transform_13(%arg0: i32) -> (i32, i32) {
    %c0_i32 = arith.constant 0 : i32
    %c0_i32_0 = arith.constant 0 : i32
    return %arg0, %c0_i32 : i32, i32
  }
  func.func @transform_14(%arg0: i32) -> (i32, i32) {
    %c0_i32 = arith.constant 0 : i32
    %c0_i32_0 = arith.constant 0 : i32
    return %arg0, %c0_i32 : i32, i32
  }
  func.func @transform_15(%arg0: i32) -> (i32, i32) {
    %c0_i32 = arith.constant 0 : i32
    %c0_i32_0 = arith.constant 0 : i32
    return %arg0, %c0_i32 : i32, i32
  }
}

</mosaic_0001>

<bundles_post_ra>
// kernel: tpu_custom_call.1
= control target key start
LH: loop header
LB: loop body
LE: loop exit
PB: predicated region body
PF: predicated region fallthrough
CT: control target
= control target key end

     0   :  { %s1182_s0 = inlined_call_operand.hbm [shape: f32[2,32], index: 0, kind: input, shape index: {}]   ;;  %s1183_s1 = inlined_call_operand.hbm [shape: f32[32,64], index: 1, kind: input, shape index: {}]   ;;  %s1184_s2 = inlined_call_operand.vmem [shape: f32[1,64], index: 2, kind: input, shape index: {}]   ;;  %s1185_s3 = inlined_call_operand.vmem [shape: f32[1,64], index: 3, kind: input, shape index: {}]   ;;  %s1186_s4 = inlined_call_operand.vmem [shape: f32[1,64], index: 4, kind: input, shape index: {}]   ;;  %s1187_s5 = inlined_call_operand.hbm [shape: f32[64,64], index: 5, kind: input, shape index: {}]   ;;  %s1188_s6 = inlined_call_operand.vmem [shape: f32[1,64], index: 6, kind: input, shape index: {}]   ;;  %s1189_s7 = inlined_call_operand.hbm [shape: f32[32,64], index: 7, kind: input, shape index: {}]   ;;  %s1190_s8 = inlined_call_operand.vmem [shape: f32[1,64], index: 8, kind: input, shape index: {}]   ;;  %s1191_s9 = inlined_call_operand.vmem [shape: f32[1,64], index: 9, kind: input, shape index: {}]   ;;  %s1192_s10 = inlined_call_operand.vmem [shape: f32[1,64], index: 10, kind: input, shape index: {}]   ;;  %s1193_s11 = inlined_call_operand.hbm [shape: f32[64,64], index: 11, kind: input, shape index: {}]   ;;  %s1194_s12 = inlined_call_operand.vmem [shape: f32[1,64], index: 12, kind: input, shape index: {}]   ;;  %s1195_s13 = inlined_call_operand.hbm [shape: f32[2,64], index: 13, kind: output, shape index: {0}]   ;;  %s1196_s14 = inlined_call_operand.hbm [shape: f32[2,64], index: 14, kind: output, shape index: {1}]   ;;  %s1197_s15 = inlined_call_operand.hbm [shape: f32[2,64], index: 15, kind: output, shape index: {2}]  }
   0x1   :  { %1199 = sst [smem:[#allocation20_spill]] %s1197_s15 }
   0x2   :  { %21 = vsyncpa [#allocation3], 0 }
   0x3   :  { %22 = vsyncpa [#allocation6], 0 }
   0x4   :  { %23 = vsyncpa [#allocation9], 0 }
   0x5   :  { %24 = vsyncpa [#allocation4], 0 }
   0x6   :  { %25 = vsyncpa [#allocation13], 0  ;;  %s934_s18 = smov [#allocation5]   ;;  %s748_s22 = scalar_lea.hbm %s1183_s1, 512 }
   0x7   :  { %s41_s19 = sshll.u32 %s934_s18, 4  ;;  %p749_p0 = scmp.ne.s32.totalorder %s1183_s1, %s748_s22  ;;  %s42_s19 = int_to_ptr.vmem [resolvable:$true] %s41_s19 }
   0x8   :  { %p752_p1 = scmp.lt.u32.totalorder %s748_s22, %s1183_s1 }
   0xa   :  { %p754_p2 = pnand %p752_p1, %p749_p0 }
   0xc   :  { %757 = shalt.err (!%p754_p2)
}
   0xd   :  { %s758_s27 = scalar_lea.vmem %s42_s19, 512  ;;  %p763_p4 = scmp.lt.s32.totalorder %s42_s19, %s42_s19 }
   0xe   :  { %p759_p3 = scmp.ne.s32.totalorder %s42_s19, %s758_s27  ;;  %p764_p5 = scmp.lt.s32.totalorder %s758_s27, %s758_s27 }
  0x10   :  { %p765_p6 = por %p764_p5, %p763_p4 }
  0x12   :  { %p766_p7 = pnand %p765_p6, %p759_p3 }
  0x14   :  { %769 = shalt.err (!%p766_p7)
}
  0x15   :  { %s935_s28 = smov 128   ;;  %s936_s29 = smov 8  }
  0x16   :  { %47 = dma.hbm_to_vmem [thread:$0]  %s1183_s1, 512, %s42_s19, [#allocation6], %s935_s28, %s935_s28, %s936_s29  }
  0x17   :  { %s937_s17 = smov [#allocation8]   ;;  %s938_s20 = smov [#allocation2]  }
  0x18   :  { %s73_s18 = sshll.u32 %s937_s17, 4  ;;  %s32_s21 = sshll.u32 %s938_s20, 4  ;;  %s74_s18 = int_to_ptr.vmem [resolvable:$true] %s73_s18  ;;  %s33_s21 = int_to_ptr.vmem [resolvable:$true] %s32_s21 }
  0x19   :  { %s770_s24 = scalar_lea.hbm %s1189_s7, 512 }
  0x1a   :  { %p771_p8 = scmp.ne.s32.totalorder %s1189_s7, %s770_s24  ;;  %p774_p9 = scmp.lt.u32.totalorder %s770_s24, %s1189_s7 }
  0x1c   :  { %p776_p10 = pnand %p774_p9, %p771_p8 }
  0x1e   :  { %779 = shalt.err (!%p776_p10)
}
  0x1f   :  { %s780_s1 = scalar_lea.vmem %s74_s18, 512  ;;  %p785_p12 = scmp.lt.s32.totalorder %s74_s18, %s74_s18 }
  0x20   :  { %p781_p11 = scmp.ne.s32.totalorder %s74_s18, %s780_s1  ;;  %p786_p13 = scmp.lt.s32.totalorder %s780_s1, %s780_s1 }
  0x22   :  { %p787_p0 = por %p786_p13, %p785_p12 }
  0x24   :  { %p788_p1 = pnand %p787_p0, %p781_p11 }
  0x26   :  { %791 = shalt.err (!%p788_p1)
}
  0x27   :  { %79 = dma.hbm_to_vmem [thread:$0]  %s1189_s7, 512, %s74_s18, [#allocation9], %s935_s28, %s935_s28, %s936_s29  }
  0x28   :  { %s792_s17 = scalar_lea.hbm %s1182_s0, 32 }
  0x29   :  { %p793_p2 = scmp.ne.s32.totalorder %s1182_s0, %s792_s17  ;;  %p796_p3 = scmp.lt.u32.totalorder %s792_s17, %s1182_s0 }
  0x2b   :  { %p798_p4 = pnand %p796_p3, %p793_p2 }
  0x2d   :  { %801 = shalt.err (!%p798_p4)
}
  0x2e   :  { %s802_s25 = scalar_lea.vmem %s33_s21, 32  ;;  %p807_p6 = scmp.lt.s32.totalorder %s33_s21, %s33_s21 }
  0x2f   :  { %p803_p5 = scmp.ne.s32.totalorder %s33_s21, %s802_s25  ;;  %p808_p7 = scmp.lt.s32.totalorder %s802_s25, %s802_s25 }
  0x31   :  { %p809_p8 = por %p808_p7, %p807_p6 }
  0x33   :  { %p810_p9 = pnand %p809_p8, %p803_p5 }
  0x35   :  { %813 = shalt.err (!%p810_p9)
}
  0x36   :  { %35 = dma.hbm_to_vmem [thread:$0]  %s1182_s0, 32, %s33_s21, [#allocation3]  }
  0x37   :  { %s939_s26 = smov [#allocation7]   ;;  %s940_s1 = smov [#allocation10]  }
  0x38   :  { %s59_s27 = sshll.u32 %s939_s26, 4  ;;  %s91_s19 = sshll.u32 %s940_s1, 4  ;;  %s60_s27 = int_to_ptr.vmem [resolvable:$true] %s59_s27  ;;  %s92_s19 = int_to_ptr.vmem [resolvable:$true] %s91_s19 }
  0x39   :  { %s814_s15 = scalar_lea.hbm %s1187_s5, 1024 }
  0x3a   :  { %p815_p10 = scmp.ne.s32.totalorder %s1187_s5, %s814_s15  ;;  %p818_p11 = scmp.lt.u32.totalorder %s814_s15, %s1187_s5 }
  0x3c   :  { %p820_p12 = pnand %p818_p11, %p815_p10 }
  0x3e   :  { %823 = shalt.err (!%p820_p12)
}
  0x3f   :  { %s824_s0 = scalar_lea.vmem %s60_s27, 1024  ;;  %p829_p0 = scmp.lt.s32.totalorder %s60_s27, %s60_s27 }
  0x40   :  { %p825_p13 = scmp.ne.s32.totalorder %s60_s27, %s824_s0  ;;  %p830_p1 = scmp.lt.s32.totalorder %s824_s0, %s824_s0 }
  0x42   :  { %p831_p2 = por %p830_p1, %p829_p0 }
  0x44   :  { %p832_p3 = pnand %p831_p2, %p825_p13 }
  0x46   :  { %835 = shalt.err (!%p832_p3)
}
  0x47   :  { %65 = dma.hbm_to_vmem [thread:$0]  %s1187_s5, 1024, %s60_s27, [#allocation6], %s935_s28, %s935_s28, %s936_s29  }
  0x48   :  { %s836_s18 = scalar_lea.hbm %s1193_s11, 1024 }
  0x49   :  { %p837_p4 = scmp.ne.s32.totalorder %s1193_s11, %s836_s18  ;;  %p840_p5 = scmp.lt.u32.totalorder %s836_s18, %s1193_s11 }
  0x4b   :  { %p842_p6 = pnand %p840_p5, %p837_p4 }
  0x4d   :  { %845 = shalt.err (!%p842_p6)
}
  0x4e   :  { %s846_s15 = scalar_lea.vmem %s92_s19, 1024  ;;  %p851_p8 = scmp.lt.s32.totalorder %s92_s19, %s92_s19 }
  0x4f   :  { %p847_p7 = scmp.ne.s32.totalorder %s92_s19, %s846_s15  ;;  %p852_p9 = scmp.lt.s32.totalorder %s846_s15, %s846_s15 }
  0x51   :  { %p853_p10 = por %p852_p9, %p851_p8 }
  0x53   :  { %p854_p11 = pnand %p853_p10, %p847_p7 }
  0x55   :  { %857 = shalt.err (!%p854_p11)
}
  0x56   :  { %97 = dma.hbm_to_vmem [thread:$0]  %s1193_s11, 1024, %s92_s19, [#allocation9], %s935_s28, %s935_s28, %s936_s29  }
  0x57   :  { %924 = dma.done.wait [#allocation3], 32  }
  0x58   :  { %925 = vsyncadd [#allocation3], 4294967264 }
  0x59   :  { %926 = dma.done.wait [#allocation6], 1536  }
  0x5a   :  { %927 = vsyncadd [#allocation6], 4294965760 }
  0x5b   :  { %928 = dma.done.wait [#allocation9], 1536  }
  0x5c   :  { %929 = vsyncadd [#allocation9], 4294965760  ;;  %v941_v0 = vmov 0.0|0.0   ;;  %vm942_vm0 = vmmov 0   ;;  %v943_v1 = vmov 0.0   ;;  %v322_v2 = vld [vmem:[#allocation8] sm:$0xff] }
  0x5d   :  { %707 = vmatprep.subr.bf16.mxu0 %v941_v0  ;;  %689 = vmatprep.subr.bf16.mxu1 %v941_v0  ;;  %v323_v3 = vld [vmem:[#allocation8 + $0x8] sm:$0xff]  ;;  %v116_v4 = vld [vmem:[#allocation5] sm:$0xff]  ;;  %v324_v7 = vld [vmem:[#allocation8 + $0x10] sm:$0xff]  ;;  %vm127_vm1 = vcmask 261120   ;;  %vm201_vm2 = vcmask 517120   ;;  %vm248_vm3 = vcmask 523264  }
  0x5e   :  { %667 = vmatprep.mubr.msk.f32.mxu0 %vm942_vm0, %v943_v1  ;;  %637 = vmatprep.mubr.msk.f32.mxu1 %vm942_vm0, %v943_v1  ;;  %v708_v5 = vpack.c.bf16 %v323_v3, %v322_v2  ;;  %v117_v6 = vld [vmem:[#allocation5 + $0x8] sm:$0xff]  ;;  %v325_v8 = vld [vmem:[#allocation8 + $0x18] sm:$0xff]  ;;  %v118_v10 = vld [vmem:[#allocation5 + $0x10] sm:$0xff]  ;;  %s944_s25 = smov [#allocation11]  }
  0x5f   :  { %v690_v9 = vpack.c.bf16 %v117_v6, %v116_v4  ;;  %v119_v11 = vld [vmem:[#allocation5 + $0x18] sm:$0xff]  ;;  %v711_v12 = vpack.c.bf16 %v325_v8, %v324_v7  ;;  %v433_v35 = vld [vmem:[#allocation10] sm:$0xff]  ;;  %v434_v36 = vld [vmem:[#allocation10 + $0x8] sm:$0xff]  ;;  %s551_s7 = sshll.u32 %s944_s25, 4  ;;  %s552_s7 = int_to_ptr.vmem [resolvable:$true] %s551_s7 }
  0x60   :  { %709 = vmatpush3.bf16.msra.mxu0 %v708_v5  ;;  %v693_v13 = vpack.c.bf16 %v119_v11, %v118_v10  ;;  %v115_v14 = vld [vmem:[#allocation2] sm:$0x3]  ;;  %v714_v37 = vpack.c.bf16 %v434_v36, %v433_v35  ;;  %v233_v38 = vld [vmem:[#allocation7] sm:$0xff]  ;;  %v234_v39 = vld [vmem:[#allocation7 + $0x8] sm:$0xff]  ;;  %p863_p13 = scmp.lt.s32.totalorder %s552_s7, %s552_s7 }
  0x61   :  { %710 = vmatprep.subr.bf16.mxu0 %v941_v0  ;;  %691 = vmatpush3.bf16.msra.mxu1 %v690_v9  ;;  %v595_v15 = vld [vmem:[%s1190_s8] ss:$0 sm:$0xff]  ;;  %v435_v40 = vld [vmem:[#allocation10 + $0x10] sm:$0xff]  ;;  %v696_v41 = vpack.c.bf16 %v234_v39, %v233_v38  ;;  %v437_v46 = vld [vmem:[#allocation10 + $0x20] sm:$0xff] }
  0x62   :  { %692 = vmatprep.subr.bf16.mxu1 %v941_v0  ;;  %v589_v16 = vld [vmem:[%s1184_s2] ss:$0 sm:$0xff]  ;;  %v235_v44 = vld [vmem:[#allocation7 + $0x10] sm:$0xff]  ;;  %v438_v48 = vld [vmem:[#allocation10 + $0x28] sm:$0xff] }
  0x63   :  { %v436_v42 = vld [vmem:[#allocation10 + $0x18] sm:$0xff]  ;;  %v720_v49 = vpack.c.bf16 %v438_v48, %v437_v46  ;;  %v237_v50 = vld [vmem:[#allocation7 + $0x20] sm:$0xff]  ;;  %v238_v51 = vld [vmem:[#allocation7 + $0x28] sm:$0xff] }
  0x64   :  { %712 = vmatpush3.bf16.msra.mxu0 %v711_v12  ;;  %v717_v43 = vpack.c.bf16 %v436_v42, %v435_v40  ;;  %v236_v45 = vld [vmem:[#allocation7 + $0x18] sm:$0xff]  ;;  %v439_v52 = vld [vmem:[#allocation10 + $0x30] sm:$0xff]  ;;  %v702_v53 = vpack.c.bf16 %v238_v51, %v237_v50 }
  0x65   :  { %694 = vmatpush3.bf16.msra.mxu1 %v693_v13  ;;  %713 = vmatprep.subr.bf16.mxu0 %v941_v0  ;;  %v699_v47 = vpack.c.bf16 %v236_v45, %v235_v44  ;;  %v440_v54 = vld [vmem:[#allocation10 + $0x38] sm:$0xff]  ;;  %v239_v56 = vld [vmem:[#allocation7 + $0x30] sm:$0xff] }
  0x66   :  { %695 = vmatprep.subr.bf16.mxu1 %v941_v0  ;;  %v723_v55 = vpack.c.bf16 %v440_v54, %v439_v52  ;;  %v240_v57 = vld [vmem:[#allocation7 + $0x38] sm:$0xff] }
  0x67   :  { %668 = vmatmul.mubr.msk.f32.vlgmr.msra.gmra.mrb[0].mxu0 %vm127_vm1, %v115_v14  ;;  %v705_v58 = vpack.c.bf16 %v240_v57, %v239_v56  ;;  %v597_v3 = vld [vmem:[%s1191_s9] ss:$0 sm:$0xff] }
  0x68   :  { %638 = vmatmul.mubr.msk.f32.vlgmr.msra.gmra.mrb[0].mxu1 %vm127_vm1, %v115_v14  ;;  %686 = vmatprep.mubr.msk.f32.mxu0 %vm942_vm0, %v943_v1  ;;  %v591_v7 = vld [vmem:[%s1185_s3] ss:$0 sm:$0xff] }
  0x69   :  { %656 = vmatprep.mubr.msk.f32.mxu1 %vm942_vm0, %v943_v1  ;;  %715 = vmatpush3.bf16.msra.mxu0 %v714_v37  ;;  %v592_v10 = vld [vmem:[%s1186_s4] ss:$0 sm:$0xff]  ;;  %s858_s4 = scalar_lea.vmem %s552_s7, 32 }
  0x6a   :  { %716 = vmatprep.subr.bf16.mxu0 %v941_v0  ;;  %697 = vmatpush3.bf16.msra.mxu1 %v696_v41  ;;  %p859_p12 = scmp.ne.s32.totalorder %s552_s7, %s858_s4  ;;  %p864_p0 = scmp.lt.s32.totalorder %s858_s4, %s858_s4 }
  0x6b   :  { %698 = vmatprep.subr.bf16.mxu1 %v941_v0 }
  0x6c   :  { %p865_p1 = por %p864_p0, %p863_p13 }
  0x6d   :  { %718 = vmatpush3.bf16.msra.mxu0 %v717_v43 }
  0x6e   :  { %719 = vmatprep.subr.bf16.mxu0 %v941_v0  ;;  %700 = vmatpush3.bf16.msra.mxu1 %v699_v47  ;;  %p866_p2 = pnand %p865_p1, %p859_p12 }
  0x6f   :  { %701 = vmatprep.subr.bf16.mxu1 %v941_v0 }
  0x71   :  { %721 = vmatpush3.bf16.msra.mxu0 %v720_v49 }
  0x72   :  { %722 = vmatprep.subr.bf16.mxu0 %v941_v0  ;;  %703 = vmatpush3.bf16.msra.mxu1 %v702_v53 }
  0x73   :  { %704 = vmatprep.subr.bf16.mxu1 %v941_v0  ;;  %v598_v0 = vld [vmem:[%s1192_s10] ss:$0 sm:$0xff] }
  0x75   :  { %724 = vmatpush3.bf16.msra.mxu0 %v723_v55 }
  0x76   :  { %706 = vmatpush3.bf16.msra.mxu1 %v705_v58 }
 0x13a   :  { %v399_v17 = vpop.f32.mrb[0].mxu0 }
 0x13b   :  { %v400_v18 = vadd.f32 %v595_v15, %v399_v17  ;;  %v669_v19 = vpop.f32.mrb[1].mxu0  ;;  %v197_v20 = vpop.f32.mrb[0].mxu1  ;;  %v599_v15 = vld [vmem:[%s1194_s12] ss:$0 sm:$0xff] }
 0x13c   :  { %v198_v21 = vadd.f32 %v589_v16, %v197_v20  ;;  %v639_v22 = vpop.f32.mrb[1].mxu1  ;;  %v593_v19 = vld [vmem:[%s1188_s6] ss:$0 sm:$0xff] }
 0x13d   :  { %v403_v23 = vsel %vm201_vm2, %v400_v18, 0.0 }
 0x13e   :  { %404 = vadd.xlane.f32.xlu0 %v403_v23  ;;  %v202_v24 = vsel %vm201_vm2, %v198_v21, 0.0 }
 0x142   :  { %203 = vadd.xlane.f32.xlu0 %v202_v24 }
 0x1cb   :  { %v405_v25 = vpop.xlane.xlu0 %404 }
 0x1cc   :  { %v406_v26 = vmul.f32 0.015625, %v405_v25 }
 0x1ce   :  { %v407_v27 = vsub.f32 %v400_v18, %v406_v26 }
 0x1cf   :  { %v204_v28 = vpop.xlane.xlu0 %203 }
 0x1d0   :  { %v206_v29 = vmul.f32 0.015625, %v204_v28  ;;  %v408_v30 = vmul.f32 %v407_v27, %v407_v27 }
 0x1d2   :  { %v207_v31 = vsub.f32 %v198_v21, %v206_v29  ;;  %v409_v32 = vsel %vm201_vm2, %v408_v30, 0.0 }
 0x1d3   :  { %410 = vadd.xlane.f32.xlu1 %v409_v32 }
 0x1d4   :  { %v208_v33 = vmul.f32 %v207_v31, %v207_v31 }
 0x1d6   :  { %v209_v34 = vsel %vm201_vm2, %v208_v33, 0.0 }
 0x1d7   :  { %210 = vadd.xlane.f32.xlu1 %v209_v34 }
 0x260   :  { %v411_v59 = vpop.xlane.xlu1 %410 }
 0x261   :  { %v412_v60 = vmul.f32 0.015625, %v411_v59 }
 0x263   :  { %v413_v61 = vadd.f32 1e-05, %v412_v60 }
 0x264   :  { %v211_v62 = vpop.xlane.xlu1 %210 }
 0x265   :  { %738 = vrsqrt.f32 %v413_v61  ;;  %v212_v63 = vmul.f32 0.015625, %v211_v62 }
 0x267   :  { %v213_v1 = vadd.f32 1e-05, %v212_v63 }
 0x269   :  { %740 = vrsqrt.f32 %v213_v1 }
 0x26f   :  { %v739_v2 = vpop.eup %738 }
 0x270   :  { %v415_v4 = vmul.f32 %v739_v2, %v407_v27 }
 0x272   :  { %v423_v5 = vmul.f32 %v597_v3, %v415_v4 }
 0x273   :  { %v741_v6 = vpop.eup %740 }
 0x274   :  { %v215_v8 = vmul.f32 %v741_v6, %v207_v31  ;;  %v431_v9 = vadd.f32 %v598_v0, %v423_v5 }
 0x276   :  { %v223_v11 = vmul.f32 %v591_v7, %v215_v8  ;;  %v432_v12 = vmax.f32 %v431_v9, 0.0 }
 0x278   :  { %687 = vmatmul.mubr.msk.f32.vlgmr.msra.gmra.mrb[2].mxu0 %vm248_vm3, %v432_v12  ;;  %v231_v13 = vadd.f32 %v592_v10, %v223_v11 }
 0x27a   :  { %v232_v14 = vmax.f32 %v231_v13, 0.0 }
 0x27c   :  { %657 = vmatmul.mubr.msk.f32.vlgmr.msra.gmra.mrb[2].mxu1 %vm248_vm3, %v232_v14 }
 0x34b   :  { %v517_v16 = vpop.f32.mrb[2].mxu0 }
 0x34c   :  { %v518_v17 = vadd.f32 %v599_v15, %v517_v16  ;;  %v688_v18 = vpop.f32.mrb[3].mxu0 }
 0x34e   :  { %v524_v20 = vand.u32 2147483647, %v518_v17 }
 0x34f   :  { %v318_v21 = vpop.f32.mrb[2].mxu1 }
 0x350   :  { %v525_v22 = vsub.f32 0.0, %v524_v20  ;;  %v319_v23 = vadd.f32 %v593_v19, %v318_v21  ;;  %v658_v24 = vpop.f32.mrb[3].mxu1 }
 0x352   :  { %v526_v25 = vmul.f32 1.442695, %v525_v22  ;;  %540 = vst.msk [vmem:[#allocation11] sm:$0x3] %vm201_vm2, %v319_v23 }
 0x353   :  { %869 = shalt.err (!%p866_p2)
}
 0x354   :  { %s870_s18 = scalar_lea.hbm %s1195_s13, 32 }
 0x355   :  { %p871_p3 = scmp.ne.s32.totalorder %s1195_s13, %s870_s18  ;;  %p874_p4 = scmp.lt.u32.totalorder %s870_s18, %s1195_s13 }
 0x357   :  { %p876_p5 = pnand %p874_p4, %p871_p3 }
 0x359   :  { %879 = shalt.err (!%p876_p5)
}
 0x35a   :  { %554 = dma.vmem_to_hbm [thread:$0]  %s552_s7, 32, %s1195_s13, [#allocation4]   ;;  %742 = vpow2.f32 %v526_v25  ;;  %v521_v34 = vmax.f32 %v518_v17, 0.0  ;;  %vm522_vm5 = vcmp.ne.f32.partialorder %v518_v17, %v518_v17 }
 0x35b   :  { %s945_s27 = smov [#allocation12]  }
 0x35c   :  { %s561_s11 = sshll.u32 %s945_s27, 4  ;;  %s562_s11 = int_to_ptr.vmem [resolvable:$true] %s561_s11 }
 0x35d   :  { %s880_s13 = scalar_lea.vmem %s562_s11, 32  ;;  %p885_p7 = scmp.lt.s32.totalorder %s562_s11, %s562_s11 }
 0x35e   :  { %p881_p6 = scmp.ne.s32.totalorder %s562_s11, %s880_s13  ;;  %p886_p8 = scmp.lt.s32.totalorder %s880_s13, %s880_s13 }
 0x360   :  { %p887_p9 = por %p886_p8, %p885_p7 }
 0x362   :  { %p888_p10 = pnand %p887_p9, %p881_p6 }
 0x364   :  { %v743_v26 = vpop.eup %742 }
 0x365   :  { %v528_v27 = vadd.f32 1.0, %v743_v26  ;;  %v531_v28 = vmul.f32 -0.5, %v743_v26  ;;  %v534_v30 = vand.u32 2147483647, %v743_v26 }
 0x367   :  { %744 = vlog2.f32 %v528_v27  ;;  %v532_v29 = vadd.f32 1.0, %v531_v28  ;;  %vm535_vm4 = vcmp.lt.f32.partialorder %v534_v30, 0.0004427343 }
 0x369   :  { %v533_v33 = vmul.f32 %v743_v26, %v532_v29 }
 0x371   :  { %v745_v31 = vpop.eup %744 }
 0x372   :  { %v530_v32 = vmul.f32 0.6931472, %v745_v31 }
 0x374   :  { %v536_v35 = vsel %vm535_vm4, %v533_v33, %v530_v32 }
 0x375   :  { %v537_v36 = vadd.f32 %v536_v35, %v521_v34 }
 0x377   :  { %v538_v37 = vsel %vm522_vm5, %v518_v17, %v537_v36 }
 0x378   :  { %v539_v38 = vadd.f32 1e-06, %v538_v37 }
 0x37a   :  { %541 = vst.msk [vmem:[#allocation12] sm:$0x3] %vm201_vm2, %v539_v38  ;;  %746 = vrcp.f32 %v539_v38 }
 0x37b   :  { %891 = shalt.err (!%p888_p10)
}
 0x37c   :  { %s892_s19 = scalar_lea.hbm %s1196_s14, 32 }
 0x37d   :  { %p893_p11 = scmp.ne.s32.totalorder %s1196_s14, %s892_s19  ;;  %p896_p12 = scmp.lt.u32.totalorder %s892_s19, %s1196_s14 }
 0x37f   :  { %p898_p13 = pnand %p896_p12, %p893_p11 }
 0x381   :  { %901 = shalt.err (!%p898_p13)
}
 0x382   :  { %564 = dma.vmem_to_hbm [thread:$0]  %s562_s11, 32, %s1196_s14, [#allocation13]  }
 0x383   :  { %s946_s0 = smov [#allocation14]  }
 0x384   :  { %s571_s21 = sshll.u32 %s946_s0, 4  ;;  %v747_v39 = vpop.eup %746  ;;  %s572_s21 = int_to_ptr.vmem [resolvable:$true] %s571_s21 }
 0x385   :  { %544 = vst.msk [vmem:[#allocation14] sm:$0x3] %vm201_vm2, %v747_v39  ;;  %s902_s9 = scalar_lea.vmem %s572_s21, 32  ;;  %p907_p1 = scmp.lt.s32.totalorder %s572_s21, %s572_s21 }
 0x386   :  { %p903_p0 = scmp.ne.s32.totalorder %s572_s21, %s902_s9  ;;  %p908_p2 = scmp.lt.s32.totalorder %s902_s9, %s902_s9 }
 0x388   :  { %p909_p3 = por %p908_p2, %p907_p1 }
 0x38a   :  { %p910_p4 = pnand %p909_p3, %p903_p0 }
 0x38c   :  { %913 = shalt.err (!%p910_p4)
}
 0x38d   :  { %s1200_s24 = sld [smem:[#allocation20_spill]] }
 0x393   :  { %s914_s25 = scalar_lea.hbm %s1200_s24, 32 }
 0x394   :  { %p915_p5 = scmp.ne.s32.totalorder %s1200_s24, %s914_s25  ;;  %p918_p6 = scmp.lt.u32.totalorder %s914_s25, %s1200_s24 }
 0x396   :  { %p920_p7 = pnand %p918_p6, %p915_p5 }
 0x398   :  { %923 = shalt.err (!%p920_p7)
}
 0x399   :  { %574 = dma.vmem_to_hbm [thread:$0]  %s572_s21, 32, %s1200_s24, [#allocation13]  }
 0x39a   :  { %930 = dma.done.wait [#allocation4], 32  }
 0x39b   :  { %931 = vsyncadd [#allocation4], 4294967264 }
 0x39c   :  { %932 = dma.done.wait [#allocation13], 64  }
 0x39d   :  { %933 = vsyncadd [#allocation13], 4294967232 }
 0x39e   :  { %584 = vsyncpa [#allocation3], 1 }
 0x39f   :  { %585 = vsyncpa [#allocation6], 1 }
 0x3a0   :  { %586 = vsyncpa [#allocation9], 1 }
 0x3a1   :  { %587 = vsyncpa [#allocation4], 1 }
 0x3a2   :  { %588 = vsyncpa [#allocation13], 1 }

</bundles_post_ra>
